<compile_context>
chip_gen: v6e
topology: v6e:2x2x1
jax: 0.10.0
libtpu: 0.0.40
codegen_flags: <defaults>
</compile_context>

<pallas_src>
import functools

import jax
import jax.numpy as jnp
from jax.experimental import pallas as pl
from jax.experimental.pallas import tpu as pltpu


# --------------------------------------------------------------------------- #
# Kernels
# --------------------------------------------------------------------------- #
def mlp_resident_kernel(x_ref, w12_ref, b12_ref, wp_ref, bp_ref, o_ref, acc_ref,
                        *, hc, n_chunks):
    """All weights VMEM-resident; static unrolled loop over hidden chunks.

    x_ref:   (TM, D)   input dtype (cast to bf16 in-kernel)
    w12_ref: (D, 2H)   bf16, chunk c = columns [c*2hc, (c+1)*2hc) = [w1_c | w2_c]
    b12_ref: (1, 2H)   f32
    wp_ref:  (H, D)    bf16
    bp_ref:  (1, D)    f32
    o_ref:   (TM, D)   output dtype
    acc_ref: (TM, D)   f32 VMEM scratch accumulator
    """
    xb = x_ref[...].astype(jnp.bfloat16)          # in-kernel cast; hidden under MXU
    acc_ref[...] = jnp.zeros_like(acc_ref)
    for c in range(n_chunks):                     # static unroll; += into scratch ref
        cols = pl.ds(c * 2 * hc, 2 * hc)
        # One fused MXU pass for both fc layers of this chunk (f32 accumulate).
        h = jnp.dot(xb, w12_ref[:, cols],
                    preferred_element_type=jnp.float32) + b12_ref[:, cols]
        h1 = h[:, :hc]                            # silu branch (c_fc1)
        h2 = h[:, hc:]                            # linear branch (c_fc2)
        g = h1 * jax.nn.sigmoid(h1) * h2          # SwiGLU gate in f32
        acc_ref[...] += jnp.dot(g.astype(wp_ref.dtype), wp_ref[pl.ds(c * hc, hc), :],
                                preferred_element_type=jnp.float32)
    o_ref[...] = (acc_ref[...] + bp_ref[...]).astype(o_ref.dtype)


def mlp_stream_kernel(x_ref, w12_ref, b12_ref, wp_ref, bp_ref, o_ref, acc_ref, *, hc):
    """Weight-streaming variant: H is the inner ("arbitrary") grid axis.

    Per (i, k) step the kernel sees one (D, 2*hc) fused fc chunk and one
    (hc, D) projection chunk; the (TM, D) f32 accumulator lives in scratch.
    """
    k = pl.program_id(1)

    @pl.when(k == 0)
    def _init():
        acc_ref[...] = jnp.zeros_like(acc_ref)

    xb = x_ref[...].astype(jnp.bfloat16)
    h = jnp.dot(xb, w12_ref[...], preferred_element_type=jnp.float32) + b12_ref[...]
    h1 = h[:, :hc]
    h2 = h[:, hc:]
    g = h1 * jax.nn.sigmoid(h1) * h2
    acc_ref[...] += jnp.dot(g.astype(wp_ref.dtype), wp_ref[...],
                            preferred_element_type=jnp.float32)

    @pl.when(k == pl.num_programs(1) - 1)
    def _finish():
        o_ref[...] = (acc_ref[...] + bp_ref[...]).astype(o_ref.dtype)


# --------------------------------------------------------------------------- #
# Wrapper
# --------------------------------------------------------------------------- #
def _vmem_limit_bytes():
    """Per-generation VMEM budget (~85% of physical), 64 MiB fallback."""
    try:
        cap = int(pltpu.get_tpu_info().vmem_capacity_bytes)
    except Exception:
        cap = 64 * 1024 * 1024
    return int(cap * 0.85)


def _round_up(v, m):
    return -(-v // m) * m


def mlp_forward(x, w1, b1, w2, b2, wp, bp, *, block_m=512, h_chunk=512,
                force_stream=False):
    """x: (B, T, D).  w1,w2: (D, H); b1,b2: (1, H); wp: (H, D); bp: (1, D)."""
    B, T, D = x.shape
    H = w1.shape[1]
    M = B * T
    x2d = x.reshape(M, D)                          # no wrapper dtype cast (in-kernel)

    # Hidden-dim chunk: largest candidate (multiple of 128) dividing H.
    hc = next((c for c in (h_chunk, 512, 384, 256, 128) if c <= H and H % c == 0), H)
    n_chunks = H // hc

    # Fused fc weights/biases: chunk c occupies columns [c*2hc,(c+1)*2hc) = [w1_c|w2_c].
    w12 = jnp.concatenate(
        [w1.reshape(D, n_chunks, hc), w2.reshape(D, n_chunks, hc)], axis=2
    ).reshape(D, 2 * H).astype(jnp.bfloat16)
    b12 = jnp.concatenate(
        [b1.reshape(1, n_chunks, hc), b2.reshape(1, n_chunks, hc)], axis=2
    ).reshape(1, 2 * H).astype(jnp.float32)
    wpb = wp.astype(jnp.bfloat16)
    bpf = bp.astype(jnp.float32)

    vmem_budget = _vmem_limit_bytes()

    # Row tile: guarantee >= 2 grid steps (megacore sharding) when M allows,
    # while keeping tiles as large as block_m to amortize per-step overhead.
    if M >= 16 and M % 8 == 0:
        tm = min(block_m, max(8, _round_up(-(-M // 2), 8)))
    else:
        tm = M                                      # tiny problems: one full tile
    grid_m = -(-M // tm)

    # Stream weights over an H grid axis when they don't comfortably fit VMEM.
    weight_bytes = w12.size * 2 + wpb.size * 2 + b12.size * 4 + bpf.size * 4
    use_stream = force_stream or (weight_bytes > 0.6 * vmem_budget)

    flops = 6 * M * D * H
    transcendentals = M * H
    weight_reads = grid_m if use_stream else 1
    bytes_accessed = int(M * D * x.dtype.itemsize * 2 + weight_bytes * weight_reads)

    row2 = lambda i: (i, 0)

    def run(single_buf_weights):
        if use_stream:
            in_specs = [
                pl.BlockSpec((tm, D), lambda i, k: (i, 0)),       # x (held across k)
                pl.BlockSpec((D, 2 * hc), lambda i, k: (0, k)),   # fused fc chunk
                pl.BlockSpec((1, 2 * hc), lambda i, k: (0, k)),   # fused bias chunk
                pl.BlockSpec((hc, D), lambda i, k: (k, 0)),       # proj chunk
                pl.BlockSpec((1, D), lambda i, k: (0, 0)),        # proj bias
            ]
            out_specs = pl.BlockSpec((tm, D), lambda i, k: (i, 0))
            grid = (grid_m, n_chunks)
            kernel = functools.partial(mlp_stream_kernel, hc=hc)
            dims = ("parallel", "arbitrary")
        else:
            fixed = lambda i: (0, 0)
            # Constant index_map -> DMA'd once; single-buffer them to free VMEM.
            kw = dict(pipeline_mode=pl.Buffered(1)) if single_buf_weights else {}
            in_specs = [
                pl.BlockSpec((tm, D), row2),                      # x row tile
                pl.BlockSpec((D, 2 * H), fixed, **kw),            # fused fc weights
                pl.BlockSpec((1, 2 * H), fixed, **kw),            # fused fc biases
                pl.BlockSpec((H, D), fixed, **kw),                # proj weights
                pl.BlockSpec((1, D), fixed, **kw),                # proj bias
            ]
            out_specs = pl.BlockSpec((tm, D), row2)
            grid = (grid_m,)
            kernel = functools.partial(mlp_resident_kernel, hc=hc, n_chunks=n_chunks)
            dims = ("parallel",)

        return pl.pallas_call(
            kernel,
            out_shape=jax.ShapeDtypeStruct((M, D), x.dtype),
            grid=grid,
            in_specs=in_specs,
            out_specs=out_specs,
            scratch_shapes=[pltpu.VMEM((tm, D), jnp.float32)],    # f32 accumulator
            compiler_params=pltpu.CompilerParams(
                dimension_semantics=dims,
                vmem_limit_bytes=vmem_budget,
            ),
            cost_estimate=pl.CostEstimate(
                flops=flops, transcendentals=transcendentals,
                bytes_accessed=bytes_accessed),
        )(x2d, w12, b12, wpb, bpf)

    try:
        out2d = run(single_buf_weights=True)
    except Exception:
        # Fallback if pipeline_mode / Buffered(1) is rejected by this JAX build.
        out2d = run(single_buf_weights=False)

    return out2d.reshape(B, T, D)


# --------------------------------------------------------------------------- #
# Params / demo
# --------------------------------------------------------------------------- #
def init_params(key, n_embd):
    """Deterministic nn.Linear-style init (uniform +-1/sqrt(fan_in))."""
    H = 4 * n_embd
    k1, k2, k3, k4, k5, k6 = jax.random.split(key, 6)

    def lin_init(kw, kb, fan_in, fan_out):
        bound = 1.0 / jnp.sqrt(fan_in)
        # stored as (in, out) == PyTorch weight.T
        w = jax.random.uniform(kw, (fan_in, fan_out), jnp.float32, -bound, bound)
        b = jax.random.uniform(kb, (1, fan_out), jnp.float32, -bound, bound)
        return w, b

    w1, b1 = lin_init(k1, k2, n_embd, H)   # c_fc1
    w2, b2 = lin_init(k3, k4, n_embd, H)   # c_fc2
    wp, bp = lin_init(k5, k6, H, n_embd)   # c_proj
    return w1, b1, w2, b2, wp, bp


if __name__ == "__main__":
    B, T, n_embd = 2, 8, 32

    key = jax.random.PRNGKey(0)
    kx, kp = jax.random.split(key)
    x = jax.random.normal(kx, (B, T, n_embd), dtype=jnp.float32)
    w1, b1, w2, b2, wp, bp = init_params(kp, n_embd)

    # f32 reference of the exact forward pass.
    h1 = x @ w1 + b1[0]
    h2 = x @ w2 + b2[0]
    ref = (h1 * jax.nn.sigmoid(h1) * h2) @ wp + bp[0]

    # Resident-weight path.
    out = mlp_forward(x, w1, b1, w2, b2, wp, bp)
    jax.block_until_ready(out)
    assert out.shape == (B, T, n_embd)
    assert out.dtype == x.dtype
    assert jnp.allclose(out, ref, atol=3e-2, rtol=3e-2), float(
        jnp.max(jnp.abs(out - ref)))

    # Also exercise the weight-streaming (H grid axis) fallback path.
    out_s = mlp_forward(x, w1, b1, w2, b2, wp, bp, force_stream=True)
    jax.block_until_ready(out_s)
    assert jnp.allclose(out_s, ref, atol=3e-2, rtol=3e-2), float(
        jnp.max(jnp.abs(out_s - ref)))

    print("KERNEL_OK")
</pallas_src>

<mosaic_0001>
module attributes {stable_mosaic.version = 11 : i64} {
  func.func @mlp_resident_kernel(%arg0: i32, %arg1: memref<8x32xf32, #tpu.memory_space<vmem>>, %arg2: memref<32x256xbf16, #tpu.memory_space<vmem>>, %arg3: memref<1x256xf32, #tpu.memory_space<vmem>>, %arg4: memref<128x32xbf16, #tpu.memory_space<vmem>>, %arg5: memref<1x32xf32, #tpu.memory_space<vmem>>, %arg6: memref<8x32xf32, #tpu.memory_space<vmem>>, %arg7: memref<8x32xf32, #tpu.memory_space<vmem>>) attributes {dimension_semantics = [#tpu.dimension_semantics<parallel>], iteration_bounds = array<i64: 2>, scalar_prefetch = 0 : i64, scratch_operands = 1 : i64, tpu.core_type = #tpu.core_type<tc>, window_params = [{transform_indices = @transform_0, window_bounds = array<i64: 8, 32>}, {pipeline_mode = #tpu.pipeline_mode<synchronous>, transform_indices = @transform_1, window_bounds = array<i64: 32, 256>}, {pipeline_mode = #tpu.pipeline_mode<synchronous>, transform_indices = @transform_2, window_bounds = array<i64: 1, 256>}, {pipeline_mode = #tpu.pipeline_mode<synchronous>, transform_indices = @transform_3, window_bounds = array<i64: 128, 32>}, {pipeline_mode = #tpu.pipeline_mode<synchronous>, transform_indices = @transform_4, window_bounds = array<i64: 1, 32>}, {transform_indices = @transform_5, window_bounds = array<i64: 8, 32>}]} {
    %c0 = arith.constant 0 : index
    %c0_0 = arith.constant 0 : index
    %0 = vector.load %arg1[%c0, %c0_0] : memref<8x32xf32, #tpu.memory_space<vmem>>, vector<8x32xf32>
    %1 = arith.truncf %0 : vector<8x32xf32> to vector<8x32xbf16>
    %cst = arith.constant 0.000000e+00 : f32
    %2 = vector.broadcast %cst : f32 to vector<8x32xf32>
    %c0_1 = arith.constant 0 : index
    %c0_2 = arith.constant 0 : index
    %3 = vector.load %arg7[%c0_1, %c0_2] : memref<8x32xf32, #tpu.memory_space<vmem>>, vector<8x32xf32>
    tpu.vector_store %arg7[%c0_1, %c0_2], %2 {strides = array<i32>} : memref<8x32xf32, #tpu.memory_space<vmem>>, vector<8x32xf32>,
    %c0_3 = arith.constant 0 : index
    %c0_4 = arith.constant 0 : index
    %4 = vector.load %arg2[%c0_3, %c0_4] : memref<32x256xbf16, #tpu.memory_space<vmem>>, vector<32x256xbf16>
    %cst_5 = arith.constant dense<0.000000e+00> : vector<8x256xf32>
    %5 = tpu.matmul %1, %4, %cst_5 {dimension_numbers = #tpu.dot_dimension_numbers<[1], [0], [0], [1], [0, 0, 1, 1], [], []>} : vector<8x32xbf16>, vector<32x256xbf16>, vector<8x256xf32> -> vector<8x256xf32>
    %c0_6 = arith.constant 0 : index
    %c0_7 = arith.constant 0 : index
    %6 = vector.load %arg3[%c0_6, %c0_7] : memref<1x256xf32, #tpu.memory_space<vmem>>, vector<1x256xf32>
    %7 = vector.broadcast %6 : vector<1x256xf32> to vector<8x256xf32>
    %8 = arith.addf %5, %7 : vector<8x256xf32>
    %9 = vector.extract_strided_slice %8 {offsets = [0, 0], sizes = [8, 128], strides = [1, 1]} : vector<8x256xf32> to vector<8x128xf32>
    %10 = vector.extract_strided_slice %8 {offsets = [0, 128], sizes = [8, 128], strides = [1, 1]} : vector<8x256xf32> to vector<8x128xf32>
    %11 = arith.negf %9 : vector<8x128xf32>
    %12 = math.exp %11 : vector<8x128xf32>
    %cst_8 = arith.constant 1.000000e+00 : f32
    %13 = vector.broadcast %cst_8 : f32 to vector<8x128xf32>
    %14 = arith.addf %13, %12 : vector<8x128xf32>
    %15 = arith.divf %13, %14 : vector<8x128xf32>
    %16 = arith.mulf %9, %15 : vector<8x128xf32>
    %17 = arith.mulf %16, %10 : vector<8x128xf32>
    %c0_9 = arith.constant 0 : index
    %c0_10 = arith.constant 0 : index
    %18 = vector.load %arg7[%c0_9, %c0_10] : memref<8x32xf32, #tpu.memory_space<vmem>>, vector<8x32xf32>
    %19 = arith.truncf %17 : vector<8x128xf32> to vector<8x128xbf16>
    %c0_11 = arith.constant 0 : index
    %c0_12 = arith.constant 0 : index
    %20 = vector.load %arg4[%c0_11, %c0_12] : memref<128x32xbf16, #tpu.memory_space<vmem>>, vector<128x32xbf16>
    %cst_13 = arith.constant dense<0.000000e+00> : vector<8x32xf32>
    %21 = tpu.matmul %19, %20, %cst_13 {dimension_numbers = #tpu.dot_dimension_numbers<[1], [0], [0], [1], [0, 0, 1, 1], [], []>} : vector<8x128xbf16>, vector<128x32xbf16>, vector<8x32xf32> -> vector<8x32xf32>
    %22 = arith.addf %18, %21 : vector<8x32xf32>
    %c0_14 = arith.constant 0 : index
    %c0_15 = arith.constant 0 : index
    %23 = vector.load %arg7[%c0_14, %c0_15] : memref<8x32xf32, #tpu.memory_space<vmem>>, vector<8x32xf32>
    tpu.vector_store %arg7[%c0_14, %c0_15], %22 {strides = array<i32>} : memref<8x32xf32, #tpu.memory_space<vmem>>, vector<8x32xf32>,
    %c0_16 = arith.constant 0 : index
    %c0_17 = arith.constant 0 : index
    %24 = vector.load %arg7[%c0_16, %c0_17] : memref<8x32xf32, #tpu.memory_space<vmem>>, vector<8x32xf32>
    %c0_18 = arith.constant 0 : index
    %c0_19 = arith.constant 0 : index
    %25 = vector.load %arg5[%c0_18, %c0_19] : memref<1x32xf32, #tpu.memory_space<vmem>>, vector<1x32xf32>
    %26 = vector.broadcast %25 : vector<1x32xf32> to vector<8x32xf32>
    %27 = arith.addf %24, %26 : vector<8x32xf32>
    %c0_20 = arith.constant 0 : index
    %c0_21 = arith.constant 0 : index
    %28 = vector.load %arg6[%c0_20, %c0_21] : memref<8x32xf32, #tpu.memory_space<vmem>>, vector<8x32xf32>
    tpu.vector_store %arg6[%c0_20, %c0_21], %27 {strides = array<i32>} : memref<8x32xf32, #tpu.memory_space<vmem>>, vector<8x32xf32>,
    return
  }
  func.func @transform_0(%arg0: i32) -> (i32, i32) {
    %c0_i32 = arith.constant 0 : i32
    %c0_i32_0 = arith.constant 0 : i32
    return %arg0, %c0_i32 : i32, i32
  }
  func.func @transform_1(%arg0: i32) -> (i32, i32) {
    %c0_i32 = arith.constant 0 : i32
    %c0_i32_0 = arith.constant 0 : i32
    %c0_i32_1 = arith.constant 0 : i32
    return %c0_i32, %c0_i32_0 : i32, i32
  }
  func.func @transform_2(%arg0: i32) -> (i32, i32) {
    %c0_i32 = arith.constant 0 : i32
    %c0_i32_0 = arith.constant 0 : i32
    %c0_i32_1 = arith.constant 0 : i32
    return %c0_i32, %c0_i32_0 : i32, i32
  }
  func.func @transform_3(%arg0: i32) -> (i32, i32) {
    %c0_i32 = arith.constant 0 : i32
    %c0_i32_0 = arith.constant 0 : i32
    %c0_i32_1 = arith.constant 0 : i32
    return %c0_i32, %c0_i32_0 : i32, i32
  }
  func.func @transform_4(%arg0: i32) -> (i32, i32) {
    %c0_i32 = arith.constant 0 : i32
    %c0_i32_0 = arith.constant 0 : i32
    %c0_i32_1 = arith.constant 0 : i32
    return %c0_i32, %c0_i32_0 : i32, i32
  }
  func.func @transform_5(%arg0: i32) -> (i32, i32) {
    %c0_i32 = arith.constant 0 : i32
    %c0_i32_0 = arith.constant 0 : i32
    return %arg0, %c0_i32 : i32, i32
  }
}

module attributes {stable_mosaic.version = 11 : i64} {
  func.func @mlp_resident_kernel(%arg0: i32, %arg1: memref<8x32xf32, #tpu.memory_space<vmem>>, %arg2: memref<32x256xbf16, #tpu.memory_space<vmem>>, %arg3: memref<1x256xf32, #tpu.memory_space<vmem>>, %arg4: memref<128x32xbf16, #tpu.memory_space<vmem>>, %arg5: memref<1x32xf32, #tpu.memory_space<vmem>>, %arg6: memref<8x32xf32, #tpu.memory_space<vmem>>, %arg7: memref<8x32xf32, #tpu.memory_space<vmem>>) attributes {dimension_semantics = [#tpu.dimension_semantics<parallel>], iteration_bounds = array<i64: 2>, scalar_prefetch = 0 : i64, scratch_operands = 1 : i64, tpu.core_type = #tpu.core_type<tc>, window_params = [{transform_indices = @transform_0, window_bounds = array<i64: 8, 32>}, {pipeline_mode = #tpu.pipeline_mode<synchronous>, transform_indices = @transform_1, window_bounds = array<i64: 32, 256>}, {pipeline_mode = #tpu.pipeline_mode<synchronous>, transform_indices = @transform_2, window_bounds = array<i64: 1, 256>}, {pipeline_mode = #tpu.pipeline_mode<synchronous>, transform_indices = @transform_3, window_bounds = array<i64: 128, 32>}, {pipeline_mode = #tpu.pipeline_mode<synchronous>, transform_indices = @transform_4, window_bounds = array<i64: 1, 32>}, {transform_indices = @transform_5, window_bounds = array<i64: 8, 32>}]} {
    %c0 = arith.constant 0 : index
    %c0_0 = arith.constant 0 : index
    %0 = vector.load %arg1[%c0, %c0_0] : memref<8x32xf32, #tpu.memory_space<vmem>>, vector<8x32xf32>
    %1 = arith.truncf %0 : vector<8x32xf32> to vector<8x32xbf16>
    %cst = arith.constant 0.000000e+00 : f32
    %2 = vector.broadcast %cst : f32 to vector<8x32xf32>
    %c0_1 = arith.constant 0 : index
    %c0_2 = arith.constant 0 : index
    %3 = vector.load %arg7[%c0_1, %c0_2] : memref<8x32xf32, #tpu.memory_space<vmem>>, vector<8x32xf32>
    tpu.vector_store %arg7[%c0_1, %c0_2], %2 {strides = array<i32>} : memref<8x32xf32, #tpu.memory_space<vmem>>, vector<8x32xf32>,
    %c0_3 = arith.constant 0 : index
    %c0_4 = arith.constant 0 : index
    %4 = vector.load %arg2[%c0_3, %c0_4] : memref<32x256xbf16, #tpu.memory_space<vmem>>, vector<32x256xbf16>
    %cst_5 = arith.constant dense<0.000000e+00> : vector<8x256xf32>
    %5 = tpu.matmul %1, %4, %cst_5 {dimension_numbers = #tpu.dot_dimension_numbers<[1], [0], [0], [1], [0, 0, 1, 1], [], []>} : vector<8x32xbf16>, vector<32x256xbf16>, vector<8x256xf32> -> vector<8x256xf32>
    %c0_6 = arith.constant 0 : index
    %c0_7 = arith.constant 0 : index
    %6 = vector.load %arg3[%c0_6, %c0_7] : memref<1x256xf32, #tpu.memory_space<vmem>>, vector<1x256xf32>
    %7 = vector.broadcast %6 : vector<1x256xf32> to vector<8x256xf32>
    %8 = arith.addf %5, %7 : vector<8x256xf32>
    %9 = vector.extract_strided_slice %8 {offsets = [0, 0], sizes = [8, 128], strides = [1, 1]} : vector<8x256xf32> to vector<8x128xf32>
    %10 = vector.extract_strided_slice %8 {offsets = [0, 128], sizes = [8, 128], strides = [1, 1]} : vector<8x256xf32> to vector<8x128xf32>
    %11 = arith.negf %9 : vector<8x128xf32>
    %12 = math.exp %11 : vector<8x128xf32>
    %cst_8 = arith.constant 1.000000e+00 : f32
    %13 = vector.broadcast %cst_8 : f32 to vector<8x128xf32>
    %14 = arith.addf %13, %12 : vector<8x128xf32>
    %15 = arith.divf %13, %14 : vector<8x128xf32>
    %16 = arith.mulf %9, %15 : vector<8x128xf32>
    %17 = arith.mulf %16, %10 : vector<8x128xf32>
    %c0_9 = arith.constant 0 : index
    %c0_10 = arith.constant 0 : index
    %18 = vector.load %arg7[%c0_9, %c0_10] : memref<8x32xf32, #tpu.memory_space<vmem>>, vector<8x32xf32>
    %19 = arith.truncf %17 : vector<8x128xf32> to vector<8x128xbf16>
    %c0_11 = arith.constant 0 : index
    %c0_12 = arith.constant 0 : index
    %20 = vector.load %arg4[%c0_11, %c0_12] : memref<128x32xbf16, #tpu.memory_space<vmem>>, vector<128x32xbf16>
    %cst_13 = arith.constant dense<0.000000e+00> : vector<8x32xf32>
    %21 = tpu.matmul %19, %20, %cst_13 {dimension_numbers = #tpu.dot_dimension_numbers<[1], [0], [0], [1], [0, 0, 1, 1], [], []>} : vector<8x128xbf16>, vector<128x32xbf16>, vector<8x32xf32> -> vector<8x32xf32>
    %22 = arith.addf %18, %21 : vector<8x32xf32>
    %c0_14 = arith.constant 0 : index
    %c0_15 = arith.constant 0 : index
    %23 = vector.load %arg7[%c0_14, %c0_15] : memref<8x32xf32, #tpu.memory_space<vmem>>, vector<8x32xf32>
    tpu.vector_store %arg7[%c0_14, %c0_15], %22 {strides = array<i32>} : memref<8x32xf32, #tpu.memory_space<vmem>>, vector<8x32xf32>,
    %c0_16 = arith.constant 0 : index
    %c0_17 = arith.constant 0 : index
    %24 = vector.load %arg7[%c0_16, %c0_17] : memref<8x32xf32, #tpu.memory_space<vmem>>, vector<8x32xf32>
    %c0_18 = arith.constant 0 : index
    %c0_19 = arith.constant 0 : index
    %25 = vector.load %arg5[%c0_18, %c0_19] : memref<1x32xf32, #tpu.memory_space<vmem>>, vector<1x32xf32>
    %26 = vector.broadcast %25 : vector<1x32xf32> to vector<8x32xf32>
    %27 = arith.addf %24, %26 : vector<8x32xf32>
    %c0_20 = arith.constant 0 : index
    %c0_21 = arith.constant 0 : index
    %28 = vector.load %arg6[%c0_20, %c0_21] : memref<8x32xf32, #tpu.memory_space<vmem>>, vector<8x32xf32>
    tpu.vector_store %arg6[%c0_20, %c0_21], %27 {strides = array<i32>} : memref<8x32xf32, #tpu.memory_space<vmem>>, vector<8x32xf32>,
    return
  }
  func.func @transform_0(%arg0: i32) -> (i32, i32) {
    %c0_i32 = arith.constant 0 : i32
    %c0_i32_0 = arith.constant 0 : i32
    return %arg0, %c0_i32 : i32, i32
  }
  func.func @transform_1(%arg0: i32) -> (i32, i32) {
    %c0_i32 = arith.constant 0 : i32
    %c0_i32_0 = arith.constant 0 : i32
    %c0_i32_1 = arith.constant 0 : i32
    return %c0_i32, %c0_i32_0 : i32, i32
  }
  func.func @transform_2(%arg0: i32) -> (i32, i32) {
    %c0_i32 = arith.constant 0 : i32
    %c0_i32_0 = arith.constant 0 : i32
    %c0_i32_1 = arith.constant 0 : i32
    return %c0_i32, %c0_i32_0 : i32, i32
  }
  func.func @transform_3(%arg0: i32) -> (i32, i32) {
    %c0_i32 = arith.constant 0 : i32
    %c0_i32_0 = arith.constant 0 : i32
    %c0_i32_1 = arith.constant 0 : i32
    return %c0_i32, %c0_i32_0 : i32, i32
  }
  func.func @transform_4(%arg0: i32) -> (i32, i32) {
    %c0_i32 = arith.constant 0 : i32
    %c0_i32_0 = arith.constant 0 : i32
    %c0_i32_1 = arith.constant 0 : i32
    return %c0_i32, %c0_i32_0 : i32, i32
  }
  func.func @transform_5(%arg0: i32) -> (i32, i32) {
    %c0_i32 = arith.constant 0 : i32
    %c0_i32_0 = arith.constant 0 : i32
    return %arg0, %c0_i32 : i32, i32
  }
}

</mosaic_0001>

<bundles_post_ra>
// kernel: tpu_custom_call.1
= control target key start
LH: loop header
LB: loop body
LE: loop exit
PB: predicated region body
PF: predicated region fallthrough
CT: control target
= control target key end

     0   :  { %10 = vsyncpa [#allocation4], 0  ;;  %s847_s0 = inlined_call_operand.vmem [shape: f32[16,32], index: 0, kind: input, shape index: {}]   ;;  %s848_s1 = inlined_call_operand.vmem [shape: bf16[32,256], index: 1, kind: input, shape index: {}]   ;;  %s849_s2 = inlined_call_operand.vmem [shape: f32[1,256], index: 2, kind: input, shape index: {}]   ;;  %s850_s3 = inlined_call_operand.vmem [shape: bf16[128,32], index: 3, kind: input, shape index: {}]   ;;  %s851_s4 = inlined_call_operand.vmem [shape: f32[1,32], index: 4, kind: input, shape index: {}]   ;;  %s852_s5 = inlined_call_operand.hbm [shape: f32[16,32], index: 5, kind: output, shape index: {}]  }
   0x1   :  { %12 = vsyncpa [#allocation4 + $0x1], 0  ;;  %s714_s18 = smov 0   ;;  %s716_s19 = smov 0  }
   0x2   :  { %s718_s20 = smov 0   ;;  %s720_s21 = smov 0  }
   0x3 LB: > { %s735_s22 = sadd.s32 4294967295, %s678_s21   ;;  %s504_s23 = sadd.s32 4294967294, %s678_s21   ;;  %s678_s21 = sphi %s720_s21, %s858_s21   ;;  %s674_s20 = sphi %s718_s20, %s857_s20   ;;  %s670_s19 = sphi %s716_s19, %s856_s19   ;;  %s666_s18 = sphi %s714_s18, %s855_s18  }
   0x4   : > { %s739_s24 = sadd.s32 1, %s678_s21   ;;  %s135_s25 = sadd.s32 1, %s674_s20 }
   0x5   : > { %s132_s26 = ssub.s32 %s678_s21, %s739_s24  ;;  %p145_p0 = scmp.ne.s32.totalorder %s674_s20, %s670_s19 }
   0x6   : > { %p133_p1 = scmp.eq.s32.totalorder %s132_s26, 0  ;;  %p146_p2 = scmp.eq.s32.totalorder %s735_s22, 1 }
   0x7   : > { %p151_p3 = scmp.ne.s32.totalorder %s670_s19, %s666_s18  ;;  %p152_p4 = scmp.eq.s32.totalorder %s504_s23, 1 }
   0x8   : > { %s750_s27 = scalar_select %p133_p1, %s674_s20, %s135_s25  }
   0x9   : > { %p752_p5 = por %p146_p2, %p145_p0  ;;  %p756_p6 = por %p152_p4, %p151_p3 }
   0xa   : > { %p507_p7 = scmp.ge.s32.totalorder %s678_s21, 1  ;;  %p189_p8 = scmp.lt.s32.totalorder %s678_s21, 3 }
   0xc   : > { %p190_p9 = pnand %p507_p7, %p189_p8 }
   0xd   : > { %p216_p10 = scmp.lt.s32.totalorder (!%p190_p9), %s735_s22, 1  ;;  %s213_s26 = sand.u32 (!%p190_p9), 1, %s670_s19  }
   0xe   : > { %193 = sbr.rel (%p190_p9) target bundleno = 479 (0x1df), region = 40  ;;  %s508_s30 = sshll.u32 (!%p190_p9), %s213_s26, 3 }
   0xf   : > { %s526_s8 = sshll.u32 (!%p190_p9), %s735_s22, 7  ;;  %s215_s9 = scalar_lea.vmem (!%p190_p9), [#allocation3], %s508_s30 }
  0x10   : > { %s445_s10 = sshll.u32 (!%p190_p9), %s215_s9, 4  ;;  %s443_s13 = scalar_lea.hbm (!%p190_p9), %s852_s5, %s526_s8  ;;  %s446_s10 = int_to_ptr.vmem [resolvable:$true] %s445_s10 }
  0x11   : > { %s618_s15 = scalar_lea.vmem (!%p190_p9), %s446_s10, 128  ;;  %s683_s16 = smov (!%p190_p9), [#allocation3]  }
  0x12   : > { %p619_p11 = scmp.ne.s32.totalorder (!%p190_p9), %s446_s10, %s618_s15 }
  0x13   : > { %v600_v0 = vld [vmem:[%s848_s1 + $0x14] ss:$8 sps:$4 sm:$0xff]   ;;  %v602_v1 = vld [vmem:[%s848_s1 + $0x10] ss:$8 sps:$4 sm:$0xff]   ;;  %v680_v2 = vmov 0   ;;  %vm223_vm0 = vcmask 261120   ;;  %v231_v16 = vlaneseq }
  0x14   : > { %296 = vmatprep.mubr.bf16.mxu0 %v680_v2  ;;  %276 = vmatprep.subr.bf16.mxu0 %v600_v0  ;;  %v603_v3 = vld [vmem:[%s848_s1 + $0x4] ss:$8 sps:$4 sm:$0xff]   ;;  %s217_s11 = scalar_select %p216_p10, %s735_s22, 1  ;;  %v681_v4 = vmov 0.0   ;;  %v605_v5 = vld [vmem:[%s848_s1] ss:$8 sps:$4 sm:$0xff]  }
  0x15   : > { %224 = vst.msk [vmem:[#allocation2] sm:$0xff] %vm223_vm0, %v681_v4  ;;  %538 = vmatprep.subr.bf16.mxu1 %v681_v4  ;;  %277 = vmatpush1.bf16.msra.mxu0 %v602_v1  ;;  %v606_v8 = vld [vmem:[%s850_s3 + $0x38] sm:$0xff]   ;;  %v607_v9 = vld [vmem:[%s850_s3 + $0x30] sm:$0xff]   ;;  %v608_v10 = vld [vmem:[%s850_s3 + $0x28] sm:$0xff]   ;;  %vm682_vm1 = vmmov 0   ;;  %v232_v17 = vshrl.u32 %v231_v16, 7  ;;  %p620_p12 = pnand %p619_p11, %p752_p5 }
  0x16   : > { %278 = vmatprep.subr.bf16.mxu0 %v603_v3  ;;  %s509_s14 = sshll.u32 %s217_s11, 3  ;;  %539 = vmatpush3.bf16.msra.mxu1 %v606_v8  ;;  %v609_v11 = vld [vmem:[%s850_s3 + $0x20] sm:$0xff]   ;;  %v610_v12 = vld [vmem:[%s850_s3 + $0x18] sm:$0xff]   ;;  %v611_v13 = vld [vmem:[%s850_s3 + $0x10] sm:$0xff]  }
  0x17   : > { %s219_s17 = scalar_lea.vmem %s847_s0, %s509_s14  ;;  %540 = vmatprep.subr.bf16.mxu1 %v681_v4  ;;  %v612_v14 = vld [vmem:[%s850_s3 + $0x8] sm:$0xff]   ;;  %v613_v15 = vld [vmem:[%s850_s3] sm:$0xff]   ;;  %554 = vmatprep.mubr.msk.bf16.mxu1 %vm682_vm1, %v681_v4  ;;  %v233_v18 = vsub.s32 0, %v232_v17  ;;  %v237_v29 = vsub.s32 1, %v232_v17  ;;  %s432_s14 = scalar_lea.sflag [#allocation4], %s213_s26 }
  0x18   : > { %v221_v6 = vld [vmem:[%s219_s17] sm:$0xff]  ;;  %p621_p13 = pneg %p620_p12  ;;  %s622_s17 = sshll.u32 %s683_s16, 4  ;;  %s623_s17 = int_to_ptr.vmem [resolvable:$false] %s622_s17 }
  0x19   : > { %279 = vmatpush1.bf16.msra.mxu0 %v605_v5  ;;  %v222_v7 = vpack.c.bf16 %v221_v6, %v221_v6  ;;  %v229_v19 = vld [vmem:[%s849_s2] sm:$0x3]  ;;  %s624_s22 = scalar_lea.vmem %s623_s17, 256  ;;  %p625_p0 = scmp.lt.s32.totalorder %s446_s10, %s623_s17 }
  0x1a   : > { %541 = vmatpush3.bf16.msra.mxu1 %v607_v9  ;;  %v234_v20 = vrot.slane %v229_v19, %v233_v18  ;;  %v238_v30 = vrot.slane %v229_v19, %v237_v29  ;;  %v524_v42 = vld [vmem:[%s851_s4] ss:$0 sm:$0xff]  ;;  %p626_p1 = scmp.lt.s32.totalorder %s624_s22, %s618_s15 }
  0x1b   : > { %542 = vmatprep.subr.bf16.mxu1 %v681_v4 }
  0x1c   : > { %514 = vmatmul.mubr.msk.bf16.vlgmr.msra.gmra.mxu0 %vm223_vm0, %v222_v7  ;;  %v313_v36 = vld [vmem:[#allocation2] sm:$0xff]  ;;  %p627_p2 = por %p626_p1, %p625_p0 }
  0x1e   : > { %543 = vmatpush3.bf16.msra.mxu1 %v608_v10  ;;  %p628_p3 = pnand %p627_p2, %p621_p13 }
  0x1f   : > { %544 = vmatprep.subr.bf16.mxu1 %v681_v4 }
  0x22   : > { %545 = vmatpush3.bf16.msra.mxu1 %v609_v11 }
  0x23   : > { %546 = vmatprep.subr.bf16.mxu1 %v681_v4 }
  0x26   : > { %547 = vmatpush3.bf16.msra.mxu1 %v610_v12 }
  0x27   : > { %548 = vmatprep.subr.bf16.mxu1 %v681_v4 }
  0x2a   : > { %549 = vmatpush3.bf16.msra.mxu1 %v611_v13 }
  0x2b   : > { %550 = vmatprep.subr.bf16.mxu1 %v681_v4 }
  0x2e   : > { %551 = vmatpush3.bf16.msra.mxu1 %v612_v14 }
  0x2f   : > { %552 = vmatprep.subr.bf16.mxu1 %v681_v4 }
  0x32   : > { %553 = vmatpush3.bf16.msra.mxu1 %v613_v15 }
  0xdc   : > { %v298_v21 = vpop.f32.mrf.mxu0 }
  0xdd   : > { %v299_v22 = vadd.f32 %v298_v21, %v234_v20 }
  0xde   : > { %v300_v23 = vpop.f32.mrf.mxu0 }
  0xdf   : > { %v515_v24 = vmul.f32 -1.442695, %v299_v22  ;;  %v301_v33 = vadd.f32 %v300_v23, %v238_v30 }
  0xe0   : > { %v302_v25 = vpop.f32.mrf.mxu0 }
  0xe1   : > { %614 = vpow2.f32 %v515_v24 }
  0xe2   : > { %v303_v26 = vpop.f32.mrf.mxu0 }
  0xee   : > { %v615_v27 = vpop.eup %614 }
  0xef   : > { %v308_v28 = vadd.f32 1.0, %v615_v27 }
  0xf1   : > { %616 = vrcp.f32 %v308_v28 }
  0xfe   : > { %v617_v31 = vpop.eup %616 }
  0xff   : > { %v311_v32 = vmul.f32 %v617_v31, %v299_v22 }
 0x101   : > { %v312_v34 = vmul.f32 %v311_v32, %v301_v33 }
 0x103   : > { %v314_v35 = vpack.c.bf16 %v312_v34, %v312_v34 }
 0x105   : > { %555 = vmatmul.mubr.bf16.vlgmr.msra.gmra.mxu1 %v314_v35 }
 0x1c5   : > { %v413_v37 = vpop.f32.mrf.mxu1 }
 0x1c6   : > { %v419_v38 = vadd.f32 %v413_v37, %v313_v36 }
 0x1c7   : > { %v556_v39 = vpop.f32.mrf.mxu1 }
 0x1c8   : > { %420 = vst.msk [vmem:[#allocation2] sm:$0xff] %vm223_vm0, %v419_v38 }
 0x1c9   : > { %v416_v40 = vpop.f32.mrf.mxu1 }
 0x1cb   : > { %v557_v41 = vpop.f32.mrf.mxu1 }
 0x1cf   : > { %v421_v43 = vld [vmem:[#allocation2] sm:$0xff] }
 0x1d0   : > { %v429_v44 = vadd.f32 %v524_v42, %v421_v43 }
 0x1d2   : > { %430 = vst.msk [vmem:[%s215_s9] sm:$0xff] %vm223_vm0, %v429_v44 }
 0x1d3   : > { %631 = shalt.err (!%p628_p3)
}
 0x1d4   : > { %s632_s23 = scalar_lea.hbm %s443_s13, 128  ;;  %s636_s30 = scalar_lea.hbm %s852_s5, 256 }
 0x1d5   : > { %p633_p4 = scmp.ne.s32.totalorder %s443_s13, %s632_s23  ;;  %p637_p9 = scmp.lt.s32.totalorder %s443_s13, %s852_s5 }
 0x1d6   : > { %p638_p10 = scmp.lt.s32.totalorder %s636_s30, %s632_s23 }
 0x1d7   : > { %p634_p7 = pnand %p633_p4, %p752_p5 }
 0x1d8   : > { %p639_p11 = por %p638_p10, %p637_p9 }
 0x1d9   : > { %p635_p8 = pneg %p634_p7 }
 0x1db   : > { %p640_p12 = pnand %p639_p11, %p635_p8 }
 0x1dd   : > { %643 = shalt.err (!%p640_p12)
}
 0x1de   : > { %558 = dma.vmem_to_hbm [thread:$0]  (%p752_p5), %s446_s10, 128, %s443_s13, %s432_s14  }
 0x1df PF: > { %p564_p13 = scmp.ge.s32.totalorder %s678_s21, 2  ;;  %s457_s8 = sand.u32 1, %s666_s18  }
 0x1e0   : > { %s458_s9 = scalar_lea.sflag [#allocation4], %s457_s8 }
 0x1e1   : > { %p561_p0 = pnand %p564_p13, %p756_p6 }
 0x1e3   : > { %p562_p1 = pneg %p561_p0 }
 0x1e5   : > { %661 = dma.done.wait (%p562_p1), %s458_s9, 128  }
 0x1e6   : > { %663 = vsyncadd (%p562_p1), %s458_s9, 4294967168  ;;  %p15_p2 = scmp.ge.s32.totalorder %s739_s24, 4   ;;  %s855_s18 = smov %s670_s19 }
 0x1e7   : > { %s856_s19 = smov %s674_s20  ;;  %s857_s20 = smov %s750_s27 }
 0x1e8   : > { %s858_s21 = smov %s739_s24  ;;  %17 = sbr.rel (!%p15_p2) target bundleno = 3 (0x3), region = 75 }
 0x1ed   :  { %463 = vsyncpa [#allocation4], 1 }
 0x1ee   :  { %465 = vsyncpa [#allocation4 + $0x1], 1 }

// kernel: tpu_custom_call.1
= control target key start
LH: loop header
LB: loop body
LE: loop exit
PB: predicated region body
PF: predicated region fallthrough
CT: control target
= control target key end

     0   :  { %10 = vsyncpa [#allocation4], 0  ;;  %s847_s0 = inlined_call_operand.vmem [shape: f32[16,32], index: 0, kind: input, shape index: {}]   ;;  %s848_s1 = inlined_call_operand.vmem [shape: bf16[32,256], index: 1, kind: input, shape index: {}]   ;;  %s849_s2 = inlined_call_operand.vmem [shape: f32[1,256], index: 2, kind: input, shape index: {}]   ;;  %s850_s3 = inlined_call_operand.vmem [shape: bf16[128,32], index: 3, kind: input, shape index: {}]   ;;  %s851_s4 = inlined_call_operand.vmem [shape: f32[1,32], index: 4, kind: input, shape index: {}]   ;;  %s852_s5 = inlined_call_operand.hbm [shape: f32[16,32], index: 5, kind: output, shape index: {}]  }
   0x1   :  { %12 = vsyncpa [#allocation4 + $0x1], 0  ;;  %s714_s18 = smov 0   ;;  %s716_s19 = smov 0  }
   0x2   :  { %s718_s20 = smov 0   ;;  %s720_s21 = smov 0  }
   0x3 LB: > { %s735_s22 = sadd.s32 4294967295, %s678_s21   ;;  %s504_s23 = sadd.s32 4294967294, %s678_s21   ;;  %s678_s21 = sphi %s720_s21, %s858_s21   ;;  %s674_s20 = sphi %s718_s20, %s857_s20   ;;  %s670_s19 = sphi %s716_s19, %s856_s19   ;;  %s666_s18 = sphi %s714_s18, %s855_s18  }
   0x4   : > { %s739_s24 = sadd.s32 1, %s678_s21   ;;  %s135_s25 = sadd.s32 1, %s674_s20 }
   0x5   : > { %s132_s26 = ssub.s32 %s678_s21, %s739_s24  ;;  %p145_p0 = scmp.ne.s32.totalorder %s674_s20, %s670_s19 }
   0x6   : > { %p133_p1 = scmp.eq.s32.totalorder %s132_s26, 0  ;;  %p146_p2 = scmp.eq.s32.totalorder %s735_s22, 1 }
   0x7   : > { %p151_p3 = scmp.ne.s32.totalorder %s670_s19, %s666_s18  ;;  %p152_p4 = scmp.eq.s32.totalorder %s504_s23, 1 }
   0x8   : > { %s750_s27 = scalar_select %p133_p1, %s674_s20, %s135_s25  }
   0x9   : > { %p752_p5 = por %p146_p2, %p145_p0  ;;  %p756_p6 = por %p152_p4, %p151_p3 }
   0xa   : > { %p507_p7 = scmp.ge.s32.totalorder %s678_s21, 1  ;;  %p189_p8 = scmp.lt.s32.totalorder %s678_s21, 3 }
   0xc   : > { %p190_p9 = pnand %p507_p7, %p189_p8 }
   0xd   : > { %p216_p10 = scmp.lt.s32.totalorder (!%p190_p9), %s735_s22, 1  ;;  %s213_s26 = sand.u32 (!%p190_p9), 1, %s670_s19  }
   0xe   : > { %193 = sbr.rel (%p190_p9) target bundleno = 479 (0x1df), region = 40  ;;  %s508_s30 = sshll.u32 (!%p190_p9), %s213_s26, 3 }
   0xf   : > { %s526_s8 = sshll.u32 (!%p190_p9), %s735_s22, 7  ;;  %s215_s9 = scalar_lea.vmem (!%p190_p9), [#allocation3], %s508_s30 }
  0x10   : > { %s445_s10 = sshll.u32 (!%p190_p9), %s215_s9, 4  ;;  %s443_s13 = scalar_lea.hbm (!%p190_p9), %s852_s5, %s526_s8  ;;  %s446_s10 = int_to_ptr.vmem [resolvable:$true] %s445_s10 }
  0x11   : > { %s618_s15 = scalar_lea.vmem (!%p190_p9), %s446_s10, 128  ;;  %s683_s16 = smov (!%p190_p9), [#allocation3]  }
  0x12   : > { %p619_p11 = scmp.ne.s32.totalorder (!%p190_p9), %s446_s10, %s618_s15 }
  0x13   : > { %v600_v0 = vld [vmem:[%s848_s1 + $0x14] ss:$8 sps:$4 sm:$0xff]   ;;  %v602_v1 = vld [vmem:[%s848_s1 + $0x10] ss:$8 sps:$4 sm:$0xff]   ;;  %v680_v2 = vmov 0   ;;  %vm223_vm0 = vcmask 261120   ;;  %v231_v16 = vlaneseq }
  0x14   : > { %296 = vmatprep.mubr.bf16.mxu0 %v680_v2  ;;  %276 = vmatprep.subr.bf16.mxu0 %v600_v0  ;;  %v603_v3 = vld [vmem:[%s848_s1 + $0x4] ss:$8 sps:$4 sm:$0xff]   ;;  %s217_s11 = scalar_select %p216_p10, %s735_s22, 1  ;;  %v681_v4 = vmov 0.0   ;;  %v605_v5 = vld [vmem:[%s848_s1] ss:$8 sps:$4 sm:$0xff]  }
  0x15   : > { %224 = vst.msk [vmem:[#allocation2] sm:$0xff] %vm223_vm0, %v681_v4  ;;  %538 = vmatprep.subr.bf16.mxu1 %v681_v4  ;;  %277 = vmatpush1.bf16.msra.mxu0 %v602_v1  ;;  %v606_v8 = vld [vmem:[%s850_s3 + $0x38] sm:$0xff]   ;;  %v607_v9 = vld [vmem:[%s850_s3 + $0x30] sm:$0xff]   ;;  %v608_v10 = vld [vmem:[%s850_s3 + $0x28] sm:$0xff]   ;;  %vm682_vm1 = vmmov 0   ;;  %v232_v17 = vshrl.u32 %v231_v16, 7  ;;  %p620_p12 = pnand %p619_p11, %p752_p5 }
  0x16   : > { %278 = vmatprep.subr.bf16.mxu0 %v603_v3  ;;  %s509_s14 = sshll.u32 %s217_s11, 3  ;;  %539 = vmatpush3.bf16.msra.mxu1 %v606_v8  ;;  %v609_v11 = vld [vmem:[%s850_s3 + $0x20] sm:$0xff]   ;;  %v610_v12 = vld [vmem:[%s850_s3 + $0x18] sm:$0xff]   ;;  %v611_v13 = vld [vmem:[%s850_s3 + $0x10] sm:$0xff]  }
  0x17   : > { %s219_s17 = scalar_lea.vmem %s847_s0, %s509_s14  ;;  %540 = vmatprep.subr.bf16.mxu1 %v681_v4  ;;  %v612_v14 = vld [vmem:[%s850_s3 + $0x8] sm:$0xff]   ;;  %v613_v15 = vld [vmem:[%s850_s3] sm:$0xff]   ;;  %554 = vmatprep.mubr.msk.bf16.mxu1 %vm682_vm1, %v681_v4  ;;  %v233_v18 = vsub.s32 0, %v232_v17  ;;  %v237_v29 = vsub.s32 1, %v232_v17  ;;  %s432_s14 = scalar_lea.sflag [#allocation4], %s213_s26 }
  0x18   : > { %v221_v6 = vld [vmem:[%s219_s17] sm:$0xff]  ;;  %p621_p13 = pneg %p620_p12  ;;  %s622_s17 = sshll.u32 %s683_s16, 4  ;;  %s623_s17 = int_to_ptr.vmem [resolvable:$false] %s622_s17 }
  0x19   : > { %279 = vmatpush1.bf16.msra.mxu0 %v605_v5  ;;  %v222_v7 = vpack.c.bf16 %v221_v6, %v221_v6  ;;  %v229_v19 = vld [vmem:[%s849_s2] sm:$0x3]  ;;  %s624_s22 = scalar_lea.vmem %s623_s17, 256  ;;  %p625_p0 = scmp.lt.s32.totalorder %s446_s10, %s623_s17 }
  0x1a   : > { %541 = vmatpush3.bf16.msra.mxu1 %v607_v9  ;;  %v234_v20 = vrot.slane %v229_v19, %v233_v18  ;;  %v238_v30 = vrot.slane %v229_v19, %v237_v29  ;;  %v524_v42 = vld [vmem:[%s851_s4] ss:$0 sm:$0xff]  ;;  %p626_p1 = scmp.lt.s32.totalorder %s624_s22, %s618_s15 }
  0x1b   : > { %542 = vmatprep.subr.bf16.mxu1 %v681_v4 }
  0x1c   : > { %514 = vmatmul.mubr.msk.bf16.vlgmr.msra.gmra.mxu0 %vm223_vm0, %v222_v7  ;;  %v313_v36 = vld [vmem:[#allocation2] sm:$0xff]  ;;  %p627_p2 = por %p626_p1, %p625_p0 }
  0x1e   : > { %543 = vmatpush3.bf16.msra.mxu1 %v608_v10  ;;  %p628_p3 = pnand %p627_p2, %p621_p13 }
  0x1f   : > { %544 = vmatprep.subr.bf16.mxu1 %v681_v4 }
  0x22   : > { %545 = vmatpush3.bf16.msra.mxu1 %v609_v11 }
  0x23   : > { %546 = vmatprep.subr.bf16.mxu1 %v681_v4 }
  0x26   : > { %547 = vmatpush3.bf16.msra.mxu1 %v610_v12 }
  0x27   : > { %548 = vmatprep.subr.bf16.mxu1 %v681_v4 }
  0x2a   : > { %549 = vmatpush3.bf16.msra.mxu1 %v611_v13 }
  0x2b   : > { %550 = vmatprep.subr.bf16.mxu1 %v681_v4 }
  0x2e   : > { %551 = vmatpush3.bf16.msra.mxu1 %v612_v14 }
  0x2f   : > { %552 = vmatprep.subr.bf16.mxu1 %v681_v4 }
  0x32   : > { %553 = vmatpush3.bf16.msra.mxu1 %v613_v15 }
  0xdc   : > { %v298_v21 = vpop.f32.mrf.mxu0 }
  0xdd   : > { %v299_v22 = vadd.f32 %v298_v21, %v234_v20 }
  0xde   : > { %v300_v23 = vpop.f32.mrf.mxu0 }
  0xdf   : > { %v515_v24 = vmul.f32 -1.442695, %v299_v22  ;;  %v301_v33 = vadd.f32 %v300_v23, %v238_v30 }
  0xe0   : > { %v302_v25 = vpop.f32.mrf.mxu0 }
  0xe1   : > { %614 = vpow2.f32 %v515_v24 }
  0xe2   : > { %v303_v26 = vpop.f32.mrf.mxu0 }
  0xee   : > { %v615_v27 = vpop.eup %614 }
  0xef   : > { %v308_v28 = vadd.f32 1.0, %v615_v27 }
  0xf1   : > { %616 = vrcp.f32 %v308_v28 }
  0xfe   : > { %v617_v31 = vpop.eup %616 }
  0xff   : > { %v311_v32 = vmul.f32 %v617_v31, %v299_v22 }
 0x101   : > { %v312_v34 = vmul.f32 %v311_v32, %v301_v33 }
 0x103   : > { %v314_v35 = vpack.c.bf16 %v312_v34, %v312_v34 }
 0x105   : > { %555 = vmatmul.mubr.bf16.vlgmr.msra.gmra.mxu1 %v314_v35 }
 0x1c5   : > { %v413_v37 = vpop.f32.mrf.mxu1 }
 0x1c6   : > { %v419_v38 = vadd.f32 %v413_v37, %v313_v36 }
 0x1c7   : > { %v556_v39 = vpop.f32.mrf.mxu1 }
 0x1c8   : > { %420 = vst.msk [vmem:[#allocation2] sm:$0xff] %vm223_vm0, %v419_v38 }
 0x1c9   : > { %v416_v40 = vpop.f32.mrf.mxu1 }
 0x1cb   : > { %v557_v41 = vpop.f32.mrf.mxu1 }
 0x1cf   : > { %v421_v43 = vld [vmem:[#allocation2] sm:$0xff] }
 0x1d0   : > { %v429_v44 = vadd.f32 %v524_v42, %v421_v43 }
 0x1d2   : > { %430 = vst.msk [vmem:[%s215_s9] sm:$0xff] %vm223_vm0, %v429_v44 }
 0x1d3   : > { %631 = shalt.err (!%p628_p3)
}
 0x1d4   : > { %s632_s23 = scalar_lea.hbm %s443_s13, 128  ;;  %s636_s30 = scalar_lea.hbm %s852_s5, 256 }
 0x1d5   : > { %p633_p4 = scmp.ne.s32.totalorder %s443_s13, %s632_s23  ;;  %p637_p9 = scmp.lt.s32.totalorder %s443_s13, %s852_s5 }
 0x1d6   : > { %p638_p10 = scmp.lt.s32.totalorder %s636_s30, %s632_s23 }
 0x1d7   : > { %p634_p7 = pnand %p633_p4, %p752_p5 }
 0x1d8   : > { %p639_p11 = por %p638_p10, %p637_p9 }
 0x1d9   : > { %p635_p8 = pneg %p634_p7 }
 0x1db   : > { %p640_p12 = pnand %p639_p11, %p635_p8 }
 0x1dd   : > { %643 = shalt.err (!%p640_p12)
}
 0x1de   : > { %558 = dma.vmem_to_hbm [thread:$0]  (%p752_p5), %s446_s10, 128, %s443_s13, %s432_s14  }
 0x1df PF: > { %p564_p13 = scmp.ge.s32.totalorder %s678_s21, 2  ;;  %s457_s8 = sand.u32 1, %s666_s18  }
 0x1e0   : > { %s458_s9 = scalar_lea.sflag [#allocation4], %s457_s8 }
 0x1e1   : > { %p561_p0 = pnand %p564_p13, %p756_p6 }
 0x1e3   : > { %p562_p1 = pneg %p561_p0 }
 0x1e5   : > { %661 = dma.done.wait (%p562_p1), %s458_s9, 128  }
 0x1e6   : > { %663 = vsyncadd (%p562_p1), %s458_s9, 4294967168  ;;  %p15_p2 = scmp.ge.s32.totalorder %s739_s24, 4   ;;  %s855_s18 = smov %s670_s19 }
 0x1e7   : > { %s856_s19 = smov %s674_s20  ;;  %s857_s20 = smov %s750_s27 }
 0x1e8   : > { %s858_s21 = smov %s739_s24  ;;  %17 = sbr.rel (!%p15_p2) target bundleno = 3 (0x3), region = 75 }
 0x1ed   :  { %463 = vsyncpa [#allocation4], 1 }
 0x1ee   :  { %465 = vsyncpa [#allocation4 + $0x1], 1 }

</bundles_post_ra>
